<compile_context>
chip_gen: v5e
topology: v5e:2x2
jax: 0.10.0
libtpu: 0.0.40
codegen_flags: <defaults>
</compile_context>

<pallas_src>
import jax
import jax.numpy as jnp
from jax.experimental import pallas as pl
from jax.experimental.pallas import tpu as pltpu

LANE = 128


# ----------------------------------------------------------------------------
# Per-chip sizing
# ----------------------------------------------------------------------------
def _vmem_budget():
    """Returns (target block elements, scoped vmem limit bytes) for this chip."""
    vmem_bytes = None
    try:
        vmem_bytes = int(pltpu.get_tpu_info().vmem_capacity_bytes)
    except Exception:
        vmem_bytes = None
    if vmem_bytes is not None and vmem_bytes >= 96 * 1024 * 1024:
        # v5e / v6e: 128 MiB physical VMEM -> 8 MiB f32 blocks, 96 MiB scoped limit.
        return 2 * 1024 * 1024, 96 * 1024 * 1024
    # v7x (64 MiB physical VMEM) or unknown chip: 4 MiB f32 blocks, 48 MiB scoped limit.
    # Worst case (3 in + 1 out) x 2 pipeline buffers x 4 MiB = 32 MiB.
    return 1024 * 1024, 48 * 1024 * 1024


# ----------------------------------------------------------------------------
# FFT glue (matches torch.fft / torch.ifft with normalized=True):
# input NCHW with C == 2 (real, imag); transform is over (H, W).  Stays in f32.
# ----------------------------------------------------------------------------
def fft_nchw_f32(x):
    z = x[:, 0].astype(jnp.float32) + 1j * x[:, 1].astype(jnp.float32)
    zf = jnp.fft.fft2(z, norm="ortho")
    return jnp.stack([jnp.real(zf), jnp.imag(zf)], axis=1)


def ifft_nchw_f32(x):
    z = x[:, 0].astype(jnp.float32) + 1j * x[:, 1].astype(jnp.float32)
    zf = jnp.fft.ifft2(z, norm="ortho")
    return jnp.stack([jnp.real(zf), jnp.imag(zf)], axis=1)


# ----------------------------------------------------------------------------
# Pallas kernel: element-wise data-consistency combine.
#   out = rec + mask * (u_k - rec) * b,   b = 1/(1+w)   (== original formula)
# ----------------------------------------------------------------------------
def dc_kernel(b_ref, rec_ref, uk_ref, mask_ref, out_ref):
    b = b_ref[0]
    rec = rec_ref[...].astype(jnp.float32)
    uk = uk_ref[...].astype(jnp.float32)
    m = mask_ref[...].astype(jnp.float32)          # may broadcast along leading dim
    out_ref[...] = (rec + m * ((uk - rec) * b)).astype(out_ref.dtype)


# ----------------------------------------------------------------------------
# Tiling helpers
# ----------------------------------------------------------------------------
def _choose_lane_width(total):
    for lw in (1024, 512, 256, 128):
        if total % lw == 0:
            return lw
    return None


def _row_align(*arrays):
    min_itemsize = int(min(a.dtype.itemsize for a in arrays))
    return 8 * max(1, 4 // min_itemsize)           # 8 (f32) / 16 (bf16) / 32 (int8)


def _row_tile(rows, lane_width, row_align, target_elems):
    # Whole row-dim in one block whenever it fits (full-dim blocks bypass alignment rules).
    if rows <= row_align or rows * lane_width <= target_elems:
        return rows
    tm = max(row_align, min(rows, target_elems // lane_width))
    return max(row_align, (tm // row_align) * row_align)


def _largest_divisor_leq(n, cap):
    cap = max(1, min(n, cap))
    for d in range(cap, 0, -1):
        if n % d == 0:
            return d
    return 1


# ----------------------------------------------------------------------------
# Main 4-D path: NCHW tensors, mask broadcast over N and/or C expressed in the BlockSpec.
# ----------------------------------------------------------------------------
def _dc_4d(b, rec, u_k, mask, target_elems, vmem_limit):
    N, C, H, W = rec.shape
    HW = H * W
    lw = _choose_lane_width(HW)
    if lw is None:
        return _dc_flat(b, rec, u_k, mask, target_elems, vmem_limit)

    R = HW // lw
    mn, mc = mask.shape[0], mask.shape[1]

    rec4 = rec.reshape(N, C, R, lw)
    uk4 = u_k.reshape(N, C, R, lw)
    mask4 = mask.reshape(mn, mc, R, lw)

    row_align = _row_align(rec, u_k, mask)

    if R * lw >= target_elems:
        # Big images: tile rows within one image.
        tm = _row_tile(R, lw, row_align, target_elems)
        bn = 1
    else:
        # Small images: span the whole image and block several batch entries per step.
        tm = R
        bn = _largest_divisor_leq(N, max(1, target_elems // (R * lw)))

    n_blocks = N // bn
    row_blocks = pl.cdiv(R, tm)

    # Guarantee >= 2 parallel blocks when possible (v7x has 2 TensorCores per chip).
    if n_blocks * C * row_blocks == 1:
        if bn > 1:
            bn = _largest_divisor_leq(N, max(1, bn // 2))
            n_blocks = N // bn
        elif R >= 2 * row_align:
            tm = max(row_align, ((R // 2) // row_align) * row_align)
            row_blocks = pl.cdiv(R, tm)

    grid = (n_blocks, C, row_blocks)

    data_spec = pl.BlockSpec((bn, None, tm, lw), lambda n, c, t: (n, c, t, 0))

    # Mask broadcast over N and/or C handled purely via the index_map (no materialization).
    if mn == 1 and mc == 1:
        m_bn, m_map = 1, (lambda n, c, t: (0, 0, t, 0))
    elif mn == 1:
        m_bn, m_map = 1, (lambda n, c, t: (0, c, t, 0))
    elif mc == 1:
        m_bn, m_map = bn, (lambda n, c, t: (n, 0, t, 0))
    else:
        m_bn, m_map = bn, (lambda n, c, t: (n, c, t, 0))
    mask_spec = pl.BlockSpec((m_bn, None, tm, lw), m_map)

    out4 = pl.pallas_call(
        dc_kernel,
        out_shape=jax.ShapeDtypeStruct((N, C, R, lw), rec.dtype),
        grid=grid,
        in_specs=[
            pl.BlockSpec(memory_space=pltpu.SMEM),   # b = 1/(1+w) scalar
            data_spec,                               # rec
            pl.BlockSpec((bn, None, tm, lw), lambda n, c, t: (n, c, t, 0)),  # u_k
            mask_spec,                               # mask (compact, broadcast via index_map)
        ],
        out_specs=pl.BlockSpec((bn, None, tm, lw), lambda n, c, t: (n, c, t, 0)),
        compiler_params=pltpu.CompilerParams(
            dimension_semantics=("parallel", "parallel", "parallel"),
            vmem_limit_bytes=vmem_limit),
    )(b, rec4, uk4, mask4)

    return out4.reshape(N, C, H, W)


# ----------------------------------------------------------------------------
# Fallback flat path (ragged H*W or non-4D): 128-aligned bulk through the kernel,
# tiny tail (< 128 elements) in plain JAX.  No whole-array pad copies.
# ----------------------------------------------------------------------------
def _dc_flat(b, rec, u_k, mask, target_elems, vmem_limit):
    shape = rec.shape
    total = rec.size
    if mask.shape != shape:
        # TODO(synk): rare ragged path still pays full mask traffic here.
        mask = jnp.broadcast_to(mask, shape)

    rec1 = rec.reshape(-1)
    uk1 = u_k.reshape(-1)
    m1 = mask.reshape(-1)

    lw = LANE
    bulk_rows = total // lw
    bulk = bulk_rows * lw

    def _jax_combine(r, u, m):
        rf = r.astype(jnp.float32)
        return (rf + m.astype(jnp.float32) * ((u.astype(jnp.float32) - rf) * b[0])).astype(rec.dtype)

    if bulk == 0:
        return _jax_combine(rec1, uk1, m1).reshape(shape)

    row_align = _row_align(rec, u_k, mask)
    tm = _row_tile(bulk_rows, lw, row_align, target_elems)
    if pl.cdiv(bulk_rows, tm) == 1 and bulk_rows >= 2 * row_align:
        tm = max(row_align, ((bulk_rows // 2) // row_align) * row_align)
    grid = (pl.cdiv(bulk_rows, tm),)

    bulk_out = pl.pallas_call(
        dc_kernel,
        out_shape=jax.ShapeDtypeStruct((bulk_rows, lw), rec.dtype),
        grid=grid,
        in_specs=[
            pl.BlockSpec(memory_space=pltpu.SMEM),
            pl.BlockSpec((tm, lw), lambda i: (i, 0)),
            pl.BlockSpec((tm, lw), lambda i: (i, 0)),
            pl.BlockSpec((tm, lw), lambda i: (i, 0)),
        ],
        out_specs=pl.BlockSpec((tm, lw), lambda i: (i, 0)),
        compiler_params=pltpu.CompilerParams(
            dimension_semantics=("parallel",),
            vmem_limit_bytes=vmem_limit),
    )(b, rec1[:bulk].reshape(bulk_rows, lw), uk1[:bulk].reshape(bulk_rows, lw),
      m1[:bulk].reshape(bulk_rows, lw))

    if bulk == total:
        return bulk_out.reshape(shape)

    tail = _jax_combine(rec1[bulk:], uk1[bulk:], m1[bulk:])
    return jnp.concatenate([bulk_out.reshape(-1), tail]).reshape(shape)


# ----------------------------------------------------------------------------
# Dispatcher
# ----------------------------------------------------------------------------
def _dc_elementwise(rec, u_k, mask, w):
    # bool -> int8 on the COMPACT mask only (before any broadcast).
    if mask.dtype == jnp.bool_:
        mask = mask.astype(jnp.int8)

    b = (1.0 / (1.0 + jnp.asarray(w, jnp.float32))).reshape((1,))
    target_elems, vmem_limit = _vmem_budget()

    if (rec.ndim == 4 and mask.ndim == 4
            and mask.shape[2:] == rec.shape[2:]
            and mask.shape[0] in (1, rec.shape[0])
            and mask.shape[1] in (1, rec.shape[1])):
        return _dc_4d(b, rec, u_k, mask, target_elems, vmem_limit)
    return _dc_flat(b, rec, u_k, mask, target_elems, vmem_limit)


# ----------------------------------------------------------------------------
# DC module (Pallas-backed forward)
# ----------------------------------------------------------------------------
class DC:
    def __init__(self):
        # nn.Parameter(torch.tensor(0.1)) -> deterministic scalar init
        self.w = jnp.float32(0.1)

    def __call__(self, rec, u_k, mask, is_img=False):
        if is_img:
            out_dtype = rec.dtype
            rec_k = fft_nchw_f32(rec)                      # f32 straight through the combine
            res = _dc_elementwise(rec_k, u_k, mask, self.w)
            return ifft_nchw_f32(res).astype(out_dtype)
        return _dc_elementwise(rec, u_k, mask, self.w)


# Pure-JAX reference using the original (un-simplified) formula.
def dc_reference(rec, u_k, mask, w, is_img=False):
    if is_img:
        rec = fft_nchw_f32(rec)
    result = mask * (rec * w / (1.0 + w) + u_k * 1.0 / (w + 1.0))
    result = result + (1.0 - mask) * rec
    if is_img:
        result = ifft_nchw_f32(result)
    return result


if __name__ == "__main__":
    key = jax.random.PRNGKey(0)
    k1, k2, k3 = jax.random.split(key, 3)

    dc = DC()

    # --- test 1: k-space + image paths, compact (N,1,H,W) sampling mask (no materialization) ---
    N, C, H, W = 2, 2, 64, 64
    rec = jax.random.normal(k1, (N, C, H, W), jnp.float32)
    u_k = jax.random.normal(k2, (N, C, H, W), jnp.float32)
    mask = jax.random.bernoulli(k3, 0.4, (N, 1, H, W)).astype(jnp.float32)

    out_k = jax.block_until_ready(dc(rec, u_k, mask, is_img=False))
    ref_k = dc_reference(rec, u_k, mask, dc.w, is_img=False)
    assert jnp.allclose(out_k, ref_k, atol=1e-5, rtol=1e-5)

    out_i = jax.block_until_ready(dc(rec, u_k, mask, is_img=True))
    ref_i = dc_reference(rec, u_k, mask, dc.w, is_img=True)
    assert jnp.allclose(out_i, ref_i, atol=1e-4, rtol=1e-4)

    # --- test 2: HW not a power-of-two multiple of 128, full-size f32 mask ---
    N2, C2, H2, W2 = 3, 2, 40, 48
    r2 = jax.random.normal(k1, (N2, C2, H2, W2), jnp.float32)
    u2 = jax.random.normal(k2, (N2, C2, H2, W2), jnp.float32)
    m2 = jax.random.bernoulli(k3, 0.5, (N2, C2, H2, W2)).astype(jnp.float32)
    o2 = jax.block_until_ready(dc(r2, u2, m2, is_img=False))
    assert jnp.allclose(o2, dc_reference(r2, u2, m2, dc.w), atol=1e-5, rtol=1e-5)

    # --- test 3: native bf16 I/O (f32 math inside the kernel) ---
    rb = rec.astype(jnp.bfloat16)
    ub = u_k.astype(jnp.bfloat16)
    mb = jnp.broadcast_to(mask, (N, C, H, W)).astype(jnp.bfloat16)
    ob = jax.block_until_ready(dc(rb, ub, mb, is_img=False))
    refb = dc_reference(rb.astype(jnp.float32), ub.astype(jnp.float32),
                        mb.astype(jnp.float32), dc.w)
    assert ob.dtype == jnp.bfloat16
    assert jnp.allclose(ob.astype(jnp.float32), refb, atol=5e-2, rtol=5e-2)

    # --- test 4: boolean compact mask (cast to int8 on the compact array only) ---
    mask_bool = mask.astype(bool)
    ob4 = jax.block_until_ready(dc(rec, u_k, mask_bool, is_img=False))
    assert jnp.allclose(ob4, ref_k, atol=1e-5, rtol=1e-5)

    # --- test 5: ragged H*W (flat bulk + plain-JAX tail path) ---
    N5, C5, H5, W5 = 2, 2, 10, 13
    r5 = jax.random.normal(k1, (N5, C5, H5, W5), jnp.float32)
    u5 = jax.random.normal(k2, (N5, C5, H5, W5), jnp.float32)
    m5 = jax.random.bernoulli(k3, 0.5, (N5, 1, H5, W5)).astype(jnp.float32)
    o5 = jax.block_until_ready(dc(r5, u5, m5, is_img=False))
    assert jnp.allclose(o5, dc_reference(r5, u5, m5, dc.w), atol=1e-5, rtol=1e-5)

    print("KERNEL_OK")
</pallas_src>

<mosaic_0001>
module attributes {stable_mosaic.version = 11 : i64} {
  func.func @dc_kernel(%arg0: i32, %arg1: i32, %arg2: i32, %arg3: memref<1xf32, #tpu.memory_space<smem>>, %arg4: memref<2x1x4x1024xf32, #tpu.memory_space<vmem>>, %arg5: memref<2x1x4x1024xf32, #tpu.memory_space<vmem>>, %arg6: memref<2x1x4x1024xf32, #tpu.memory_space<vmem>>, %arg7: memref<2x1x4x1024xf32, #tpu.memory_space<vmem>>) attributes {dimension_semantics = [#tpu.dimension_semantics<parallel>, #tpu.dimension_semantics<parallel>, #tpu.dimension_semantics<parallel>], iteration_bounds = array<i64: 1, 2, 1>, scalar_prefetch = 0 : i64, scratch_operands = 0 : i64, tpu.core_type = #tpu.core_type<tc>, window_params = [{transform_indices = @transform_0, window_bounds = array<i64: 1>}, {transform_indices = @transform_1, window_bounds = array<i64: 2, 1, 4, 1024>}, {transform_indices = @transform_2, window_bounds = array<i64: 2, 1, 4, 1024>}, {transform_indices = @transform_3, window_bounds = array<i64: 2, 1, 4, 1024>}, {transform_indices = @transform_4, window_bounds = array<i64: 2, 1, 4, 1024>}]} {
    %c0 = arith.constant 0 : index
    %0 = memref.load %arg3[%c0] : memref<1xf32, #tpu.memory_space<smem>>
    %c0_0 = arith.constant 0 : index
    %c0_1 = arith.constant 0 : index
    %c0_2 = arith.constant 0 : index
    %c0_3 = arith.constant 0 : index
    %1 = vector.load %arg4[%c0_0, %c0_1, %c0_2, %c0_3] : memref<2x1x4x1024xf32, #tpu.memory_space<vmem>>, vector<2x1x4x1024xf32>
    %2 = vector.shape_cast %1 : vector<2x1x4x1024xf32> to vector<2x4x1024xf32>
    %c0_4 = arith.constant 0 : index
    %c0_5 = arith.constant 0 : index
    %c0_6 = arith.constant 0 : index
    %c0_7 = arith.constant 0 : index
    %3 = vector.load %arg5[%c0_4, %c0_5, %c0_6, %c0_7] : memref<2x1x4x1024xf32, #tpu.memory_space<vmem>>, vector<2x1x4x1024xf32>
    %4 = vector.shape_cast %3 : vector<2x1x4x1024xf32> to vector<2x4x1024xf32>
    %c0_8 = arith.constant 0 : index
    %c0_9 = arith.constant 0 : index
    %c0_10 = arith.constant 0 : index
    %c0_11 = arith.constant 0 : index
    %5 = vector.load %arg6[%c0_8, %c0_9, %c0_10, %c0_11] : memref<2x1x4x1024xf32, #tpu.memory_space<vmem>>, vector<2x1x4x1024xf32>
    %6 = vector.shape_cast %5 : vector<2x1x4x1024xf32> to vector<2x4x1024xf32>
    %7 = arith.subf %4, %2 : vector<2x4x1024xf32>
    %8 = vector.broadcast %0 : f32 to vector<2x4x1024xf32>
    %9 = arith.mulf %7, %8 : vector<2x4x1024xf32>
    %10 = arith.mulf %6, %9 : vector<2x4x1024xf32>
    %11 = arith.addf %2, %10 : vector<2x4x1024xf32>
    %c0_12 = arith.constant 0 : index
    %c0_13 = arith.constant 0 : index
    %c0_14 = arith.constant 0 : index
    %c0_15 = arith.constant 0 : index
    %12 = vector.load %arg7[%c0_12, %c0_13, %c0_14, %c0_15] : memref<2x1x4x1024xf32, #tpu.memory_space<vmem>>, vector<2x1x4x1024xf32>
    %13 = vector.shape_cast %12 : vector<2x1x4x1024xf32> to vector<2x4x1024xf32>
    %14 = vector.shape_cast %11 : vector<2x4x1024xf32> to vector<2x1x4x1024xf32>
    tpu.vector_store %arg7[%c0_12, %c0_13, %c0_14, %c0_15], %14 {strides = array<i32>} : memref<2x1x4x1024xf32, #tpu.memory_space<vmem>>, vector<2x1x4x1024xf32>,
    return
  }
  func.func @transform_0(%arg0: i32, %arg1: i32, %arg2: i32) -> i32 {
    %c0_i32 = arith.constant 0 : i32
    %c0_i32_0 = arith.constant 0 : i32
    return %c0_i32 : i32
  }
  func.func @transform_1(%arg0: i32, %arg1: i32, %arg2: i32) -> (i32, i32, i32, i32) {
    %c0_i32 = arith.constant 0 : i32
    %c0_i32_0 = arith.constant 0 : i32
    return %arg0, %arg1, %arg2, %c0_i32 : i32, i32, i32, i32
  }
  func.func @transform_2(%arg0: i32, %arg1: i32, %arg2: i32) -> (i32, i32, i32, i32) {
    %c0_i32 = arith.constant 0 : i32
    %c0_i32_0 = arith.constant 0 : i32
    return %arg0, %arg1, %arg2, %c0_i32 : i32, i32, i32, i32
  }
  func.func @transform_3(%arg0: i32, %arg1: i32, %arg2: i32) -> (i32, i32, i32, i32) {
    %c0_i32 = arith.constant 0 : i32
    %c0_i32_0 = arith.constant 0 : i32
    %c0_i32_1 = arith.constant 0 : i32
    return %arg0, %c0_i32, %arg2, %c0_i32_0 : i32, i32, i32, i32
  }
  func.func @transform_4(%arg0: i32, %arg1: i32, %arg2: i32) -> (i32, i32, i32, i32) {
    %c0_i32 = arith.constant 0 : i32
    %c0_i32_0 = arith.constant 0 : i32
    return %arg0, %arg1, %arg2, %c0_i32 : i32, i32, i32, i32
  }
}

</mosaic_0001>

<bundles_post_ra>
// kernel: tpu_custom_call.1
= control target key start
LH: loop header
LB: loop body
LE: loop exit
PB: predicated region body
PF: predicated region fallthrough
CT: control target
= control target key end

     0   :  { %s1072_s0 = inlined_call_operand.<no memory space> [shape: f32[1], index: 0, kind: input, shape index: {}]   ;;  %s1073_s1 = inlined_call_operand.hbm [shape: f32[2,2,4,1024], index: 1, kind: input, shape index: {}]   ;;  %s1074_s2 = inlined_call_operand.hbm [shape: f32[2,2,4,1024], index: 2, kind: input, shape index: {}]   ;;  %s1075_s3 = inlined_call_operand.hbm [shape: f32[2,1,4,1024], index: 3, kind: input, shape index: {}]   ;;  %s1076_s4 = inlined_call_operand.hbm [shape: f32[2,2,4,1024], index: 4, kind: output, shape index: {}]  }
   0x1   :  { %1083 = sst [smem:[#allocation17_spill]] %s1075_s3 }
   0x2   :  { %9 = sst [smem:[#allocation2]] %s1072_s0 }
   0x3   :  { %10 = vsyncpa [#allocation4], 0 }
   0x4   :  { %12 = vsyncpa [#allocation4 + $0x1], 0 }
   0x5   :  { %13 = vsyncpa [#allocation7], 0 }
   0x6   :  { %15 = vsyncpa [#allocation7 + $0x1], 0 }
   0x7   :  { %16 = vsyncpa [#allocation5], 0 }
   0x8   :  { %18 = vsyncpa [#allocation5 + $0x1], 0  ;;  %s883_s17 = smov 0   ;;  %s885_s18 = smov 0  }
   0x9   :  { %s887_s19 = smov 0   ;;  %s889_s20 = smov 0  }
   0xa   :  { %s891_s21 = smov 0   ;;  %s893_s22 = smov 0  }
   0xb LB: > { %1084 = sst [smem:[#allocation14_spill]] %s842_s21  ;;  %s914_s0 = sadd.s32 4294967295, %s846_s22   ;;  %s846_s22 = sphi %s893_s22, %s24_s22   ;;  %s842_s21 = sphi %s891_s21, %s1097_s21   ;;  %s838_s20 = sphi %s889_s20, %s1096_s20   ;;  %s834_s19 = sphi %s887_s19, %s1100_s19   ;;  %s830_s18 = sphi %s885_s18, %s1099_s18   ;;  %s826_s17 = sphi %s883_s17, %s1098_s17  }
   0xc   : > { %s559_s23 = sadd.s32 4294967294, %s846_s22   ;;  %p88_p0 = scmp.ne.s32.totalorder %s830_s18, %s826_s17 }
   0xd   : > { %p89_p1 = scmp.eq.s32.totalorder %s914_s0, 0  ;;  %p174_p2 = scmp.eq.s32.totalorder %s914_s0, 1 }
   0xe   : > { %p180_p3 = scmp.eq.s32.totalorder %s559_s23, 1  ;;  %p560_p5 = scmp.ge.s32.totalorder %s846_s22, 1 }
   0xf   : > { %p923_p4 = por %p89_p1, %p88_p0  ;;  %p187_p7 = scmp.lt.s32.totalorder %s846_s22, 3 }
  0x10   : > { %p928_p6 = por %p180_p3, %p88_p0  ;;  %s1087_s3 = sld [smem:[#allocation17_spill]] }
  0x11   : > { %p936_p8 = pnand %p560_p5, %p187_p7  ;;  %s848_s30 = smov [#allocation8]  }
  0x12   : > { %s209_s5 = sshll.u32 %s848_s30, 4  ;;  %p562_p11 = scmp.ge.s32.totalorder %s846_s22, 2  ;;  %s210_s5 = int_to_ptr.vmem [resolvable:$true] %s209_s5 }
  0x13   : > { %p592_p9 = pneg %p936_p8  ;;  %s1077_s6 = smov 512  }
  0x14   : > { %s1079_s7 = smov 32   ;;  %s39_s8 = sadd.s32 1, %s842_s21 }
  0x15   : > { %p593_p10 = pnand %p592_p9, %p89_p1  ;;  %p41_p12 = scmp.ge.s32.totalorder %s39_s8, 2 }
  0x16   : > { %s207_s28 = sshll.u32 %s1087_s3, 4  ;;  %s75_s9 = sadd.s32 1, %s834_s19  ;;  %s208_s28 = int_to_ptr.hbm [resolvable:$true] %s207_s28 }
  0x17   : > { %595 = dma.hbm_to_vmem [thread:$0]  (!%p593_p10), %s208_s28, 1024, %s210_s5, [#allocation7], %s1077_s6, %s1077_s6, %s1079_s7  }
  0x18   : > { %p82_p13 = scmp.ne.s32.totalorder %s834_s19, %s830_s18  ;;  %p83_p0 = scmp.eq.s32.totalorder %s846_s22, 0 }
  0x19   : > { %s1102_s8 = smov (%p41_p12, %s39_s8), 0  ;;  %p608_p7 = scmp.lt.s32.totalorder %s846_s22, 2 }
  0x1a   : > { %1089 = sst [smem:[#allocation15_spill]] %s1102_s8  ;;  %p955_p3 = por %p83_p0, %p82_p13 }
  0x1b   : > { %p961_p5 = por %p174_p2, %p82_p13  ;;  %s69_s12 = ssub.s32 %s842_s21, %s1102_s8 }
  0x1c   : > { %p73_p9 = scmp.eq.s32.totalorder %s69_s12, 0  ;;  %s223_s13 = sand.u32 1, %s834_s19  }
  0x1d   : > { %s563_s14 = sshll.u32 %s223_s13, 6  ;;  %s579_s16 = sshll.u32 %s842_s21, 5 }
  0x1e   : > { %s970_s15 = scalar_select %p73_p9, %s834_s19, %s75_s9  }
  0x1f   : > { %s237_s27 = scalar_lea.hbm %s1073_s1, %s579_s16  ;;  %s227_s28 = scalar_lea.vmem [#allocation3], %s563_s14 }
  0x20   : > { %1092 = sst [smem:[#allocation16_spill]] %s970_s15  ;;  %s240_s30 = sshll.u32 %s227_s28, 4  ;;  %s241_s30 = int_to_ptr.vmem [resolvable:$true] %s240_s30 }
  0x21   : > { %s238_s5 = sshll.u32 %s237_s27, 4  ;;  %p597_p2 = pnand %p608_p7, %p955_p3  ;;  %s239_s5 = int_to_ptr.hbm [resolvable:$true] %s238_s5 }
  0x22   : > { %s264_s12 = scalar_lea.hbm %s1074_s2, %s579_s16  ;;  %s224_s3 = scalar_lea.sflag [#allocation4], %s223_s13 }
  0x23   : > { %s851_s9 = smov 1024   ;;  %s1093_s8 = smov 32  }
  0x24   : > { %s1094_s21 = smov 512   ;;  %s265_s15 = sshll.u32 %s264_s12, 4  ;;  %s266_s15 = int_to_ptr.hbm [resolvable:$true] %s265_s15 }
  0x25   : > { %599 = dma.hbm_to_vmem [thread:$0]  (!%p597_p2), %s239_s5, 1024, %s241_s30, %s224_s3, %s851_s9, %s1094_s21, %s1093_s8  }
  0x26   : > { %s254_s23 = scalar_lea.vmem [#allocation6], %s563_s14  ;;  %s250_s28 = sand.u32 1, %s846_s22  }
  0x27   : > { %s267_s26 = sshll.u32 %s254_s23, 4  ;;  %s251_s27 = scalar_lea.sflag [#allocation7], %s250_s28  ;;  %s268_s26 = int_to_ptr.vmem [resolvable:$true] %s267_s26 }
  0x28   : > { %602 = dma.hbm_to_vmem [thread:$0]  (!%p597_p2), %s266_s15, 1024, %s268_s26, %s251_s27, %s851_s9, %s1094_s21, %s1093_s8  }
  0x29   : > { %279 = sbr.rel (%p936_p8) target bundleno = 77 (0x4d), region = 36  ;;  %s989_s6 = sand.u32 (!%p936_p8), 1, %s830_s18  }
  0x2a   : > { %s992_s3 = sshll.u32 (!%p936_p8), %s989_s6, 6  ;;  %s282_s7 = scalar_lea.sflag (!%p936_p8), [#allocation4], %s989_s6 }
  0x2b   : > { %s996_s10 = scalar_lea.vmem (!%p936_p8), [#allocation3], %s992_s3 }
  0x2e   : > { %809 = dma.done.wait (%p923_p4), %s282_s7, 1024  }
  0x2f   : > { %811 = vsyncadd (%p923_p4), %s282_s7, 4294966272  ;;  %s291_s21 = sand.u32 1, %s914_s0   ;;  %s1004_s8 = scalar_lea.vmem [#allocation6], %s992_s3 }
  0x30   : > { %s292_s29 = scalar_lea.sflag [#allocation7], %s291_s21 }
  0x31   : > { %813 = dma.done.wait (%p923_p4), %s292_s29, 1024  }
  0x32   : > { %815 = vsyncadd (%p923_p4), %s292_s29, 4294966272 }
  0x33   : > { %817 = dma.done.wait (%p89_p1), [#allocation7], 1024  }
  0x34   : > { %819 = vsyncadd (%p89_p1), [#allocation7], 4294966272  ;;  %s335_s13 = sld [smem:[#allocation2]]  ;;  %v336_v0 = vld [vmem:[%s996_s10] sm:$0xff]  ;;  %v337_v4 = vld [vmem:[%s996_s10 + $0x8] sm:$0xff]  ;;  %s581_s0 = sshll.u32 %s838_s20, 5 }
  0x35   : > { %v344_v1 = vld [vmem:[%s1004_s8] sm:$0xff]  ;;  %v345_v5 = vld [vmem:[%s1004_s8 + $0x8] sm:$0xff]  ;;  %v338_v8 = vld [vmem:[%s996_s10 + $0x10] sm:$0xff]  ;;  %s418_s14 = scalar_lea.hbm %s1076_s4, %s581_s0  ;;  %s330_s15 = scalar_lea.vmem [#allocation9], %s992_s3 }
  0x36   : > { %v360_v3 = vsub.f32 %v344_v1, %v336_v0  ;;  %v352_v6 = vld [vmem:[#allocation8] sm:$0xff]  ;;  %v361_v7 = vsub.f32 %v345_v5, %v337_v4  ;;  %v346_v9 = vld [vmem:[%s1004_s8 + $0x10] sm:$0xff]  ;;  %v353_v11 = vld [vmem:[#allocation8 + $0x8] sm:$0xff]  ;;  %s419_s16 = sshll.u32 %s330_s15, 4  ;;  %s421_s30 = sshll.u32 %s418_s14, 4  ;;  %s1035_s16 = int_to_ptr.vmem [resolvable:$true] %s419_s16  ;;  %s422_s30 = int_to_ptr.hbm [resolvable:$true] %s421_s30 }
  0x37   : > { %v362_v12 = vsub.f32 %v346_v9, %v338_v8  ;;  %v339_v13 = vld [vmem:[%s996_s10 + $0x18] sm:$0xff]  ;;  %v354_v16 = vld [vmem:[#allocation8 + $0x10] sm:$0xff]  ;;  %v340_v18 = vld [vmem:[%s996_s10 + $0x20] sm:$0xff]  ;;  %s402_s5 = scalar_lea.sflag [#allocation5], %s989_s6  ;;  %s770_s12 = sshra.s32 %s422_s30, 4  ;;  %s771_s12 = int_to_ptr.hbm [resolvable:$true] %s770_s12 }
  0x38   : > { %v347_v14 = vld [vmem:[%s1004_s8 + $0x18] sm:$0xff]  ;;  %v348_v19 = vld [vmem:[%s1004_s8 + $0x20] sm:$0xff]  ;;  %v341_v24 = vld [vmem:[%s996_s10 + $0x28] sm:$0xff]  ;;  %s772_s9 = scalar_lea.hbm %s771_s12, 64  ;;  %s776_s28 = scalar_lea.hbm %s1076_s4, 128 }
  0x39   : > { %v363_v17 = vsub.f32 %v347_v14, %v339_v13  ;;  %v355_v22 = vld [vmem:[#allocation8 + $0x18] sm:$0xff]  ;;  %v364_v23 = vsub.f32 %v348_v19, %v340_v18  ;;  %v349_v25 = vld [vmem:[%s1004_s8 + $0x28] sm:$0xff]  ;;  %v356_v28 = vld [vmem:[#allocation8 + $0x20] sm:$0xff]  ;;  %p773_p1 = scmp.ne.s32.totalorder %s771_s12, %s772_s9  ;;  %p777_p10 = scmp.lt.s32.totalorder %s771_s12, %s1076_s4 }
  0x3a   : > { %v368_v2 = vstv %s335_s13  ;;  %v365_v29 = vsub.f32 %v349_v25, %v341_v24  ;;  %v342_v30 = vld [vmem:[%s996_s10 + $0x30] sm:$0xff]  ;;  %v357_v35 = vld [vmem:[#allocation8 + $0x28] sm:$0xff]  ;;  %v343_v37 = vld [vmem:[%s996_s10 + $0x38] sm:$0xff]  ;;  %p778_p12 = scmp.lt.s32.totalorder %s776_s28, %s772_s9 }
  0x3b   : > { %v369_v10 = vmul.f32 %v368_v2, %v360_v3  ;;  %v370_v15 = vmul.f32 %v368_v2, %v361_v7  ;;  %v371_v21 = vmul.f32 %v368_v2, %v362_v12  ;;  %v372_v27 = vmul.f32 %v368_v2, %v363_v17  ;;  %v350_v31 = vld [vmem:[%s1004_s8 + $0x30] sm:$0xff]  ;;  %v351_v38 = vld [vmem:[%s1004_s8 + $0x38] sm:$0xff]  ;;  %p774_p4 = pnand %p773_p1, %p961_p5 }
  0x3c   : > { %v373_v34 = vmul.f32 %v368_v2, %v364_v23  ;;  %v366_v36 = vsub.f32 %v350_v31, %v342_v30  ;;  %v374_v41 = vmul.f32 %v368_v2, %v365_v29  ;;  %v358_v42 = vld [vmem:[#allocation8 + $0x30] sm:$0xff]  ;;  %v367_v43 = vsub.f32 %v351_v38, %v343_v37  ;;  %v359_v47 = vld [vmem:[#allocation8 + $0x38] sm:$0xff]  ;;  %p779_p13 = por %p778_p12, %p777_p10 }
  0x3d   : > { %v377_v20 = vmul.f32 %v369_v10, %v352_v6  ;;  %v378_v26 = vmul.f32 %v370_v15, %v353_v11  ;;  %v379_v33 = vmul.f32 %v371_v21, %v354_v16  ;;  %v380_v40 = vmul.f32 %v372_v27, %v355_v22  ;;  %p775_p8 = pneg %p774_p4 }
  0x3e   : > { %v381_v45 = vmul.f32 %v373_v34, %v356_v28  ;;  %v375_v46 = vmul.f32 %v368_v2, %v366_v36  ;;  %v382_v49 = vmul.f32 %v374_v41, %v357_v35  ;;  %v376_v50 = vmul.f32 %v368_v2, %v367_v43 }
  0x3f   : > { %v385_v32 = vadd.f32 %v377_v20, %v336_v0  ;;  %v386_v39 = vadd.f32 %v378_v26, %v337_v4  ;;  %v387_v44 = vadd.f32 %v379_v33, %v338_v8  ;;  %v388_v48 = vadd.f32 %v380_v40, %v339_v13  ;;  %p780_p0 = pnand %p779_p13, %p775_p8 }
  0x40   : > { %v389_v51 = vadd.f32 %v381_v45, %v340_v18  ;;  %v383_v52 = vmul.f32 %v375_v46, %v358_v42  ;;  %v390_v53 = vadd.f32 %v382_v49, %v341_v24  ;;  %v384_v54 = vmul.f32 %v376_v50, %v359_v47 }
  0x41   : > { %393 = vst [vmem:[%s330_s15] sm:$0xff] %v385_v32 }
  0x42   : > { %394 = vst [vmem:[%s330_s15 + $0x8] sm:$0xff] %v386_v39  ;;  %v391_v55 = vadd.f32 %v383_v52, %v342_v30  ;;  %v392_v56 = vadd.f32 %v384_v54, %v343_v37 }
  0x43   : > { %395 = vst [vmem:[%s330_s15 + $0x10] sm:$0xff] %v387_v44 }
  0x44   : > { %396 = vst [vmem:[%s330_s15 + $0x18] sm:$0xff] %v388_v48 }
  0x45   : > { %397 = vst [vmem:[%s330_s15 + $0x20] sm:$0xff] %v389_v51 }
  0x46   : > { %398 = vst [vmem:[%s330_s15 + $0x28] sm:$0xff] %v390_v53 }
  0x47   : > { %399 = vst [vmem:[%s330_s15 + $0x30] sm:$0xff] %v391_v55 }
  0x48   : > { %400 = vst [vmem:[%s330_s15 + $0x38] sm:$0xff] %v392_v56 }
  0x49   : > { %783 = shalt.err (!%p780_p0)
}
  0x4a   : > { %s852_s6 = smov 512   ;;  %s853_s7 = smov 1024  }
  0x4b   : > { %s854_s10 = smov 32  }
  0x4c   : > { %590 = dma.vmem_to_hbm [thread:$0]  (%p961_p5), %s1035_s16, 1024, %s422_s30, %s402_s5, %s852_s6, %s853_s7, %s854_s10  }
  0x4d PF: > { %s436_s21 = sand.u32 1, %s826_s17   ;;  %p604_p3 = pnand %p562_p11, %p928_p6 }
  0x4e   : > { %s437_s29 = scalar_lea.sflag [#allocation5], %s436_s21 }
  0x4f   : > { %p605_p7 = pneg %p604_p3 }
  0x51   : > { %821 = dma.done.wait (%p605_p7), %s437_s29, 1024  }
  0x52   : > { %823 = vsyncadd (%p605_p7), %s437_s29, 4294966272  ;;  %s24_s22 = sadd.s32 1, %s846_s22   ;;  %s1095_s8 = sld [smem:[#allocation16_spill]] }
  0x53   : > { %p21_p9 = scmp.ge.s32.totalorder %s24_s22, 4   ;;  %s1096_s20 = sld [smem:[#allocation14_spill]] }
  0x54   : > { %s1097_s21 = sld [smem:[#allocation15_spill]]  ;;  %s1098_s17 = smov %s830_s18 }
  0x55   : > { %s1099_s18 = smov %s834_s19  ;;  %23 = sbr.rel (!%p21_p9) target bundleno = 11 (0xb), region = 99 }
  0x58   : > { %s1100_s19 = smov %s1095_s8 }
  0x5a   :  { %443 = vsyncpa [#allocation4], 1 }
  0x5b   :  { %445 = vsyncpa [#allocation4 + $0x1], 1 }
  0x5c   :  { %446 = vsyncpa [#allocation7], 1 }
  0x5d   :  { %448 = vsyncpa [#allocation7 + $0x1], 1 }
  0x5e   :  { %449 = vsyncpa [#allocation5], 1 }
  0x5f   :  { %451 = vsyncpa [#allocation5 + $0x1], 1 }

</bundles_post_ra>
